<compile_context>
chip_gen: v7x
topology: tpu7x:2x2x1
jax: 0.10.0
libtpu: 0.0.40
codegen_flags: <defaults>
</compile_context>

<pallas_src>
import math

import jax
import jax.numpy as jnp
from jax import lax
from jax.experimental import pallas as pl
from jax.experimental.pallas import tpu as pltpu

SUBLANE = 8    # fc3 out_dim (2) padded to a full sublane group for dense stores
LANE = 128     # batch-tile granularity when tiling (lane axis of the output)


def actor_forward_kernel(s_ref, w3t_ref, b3t_ref, out_ref):
    # Reference dead ops (results overwritten before use; kept for fidelity):
    #   action = self.fc1(state); action = T.relu(state)
    #   action = self.fc2(state); action = T.relu(state)
    # Live computation: action = self.fc3(state) == state @ w3 + b3.
    state = s_ref[...].astype(jnp.bfloat16)          # (tm, K) — MXU-native dtype
    w3t = w3t_ref[...]                                # (8, K) bf16, rows 2..7 zero
    # (8, tm) = w3t (8, K) · state (tm, K), contracting on K; f32 accumulate.
    acc = lax.dot_general(w3t, state,
                          dimension_numbers=(((1,), (1,)), ((), ())),
                          preferred_element_type=jnp.float32)
    out_ref[...] = (acc + b3t_ref[...]).astype(out_ref.dtype)


def _pick_tm(B):
    """Batch tile: lane-aligned, capped at 1024, and >= 2 blocks when B is large
    enough so dimension_semantics=('parallel',) can shard across v7x's two TCs."""
    if B <= 2 * LANE:
        return B                        # single block; shapes equal full array dims
    half = -(-B // 2)                   # ceil(B / 2)
    return max(LANE, min(1024, (half // LANE) * LANE))


def actor_forward(state, params):
    """state: (B, input_dims) f32.  Returns (B, 2) f32 == fc3(state)."""
    B, D = state.shape
    w3t = params["w3t_padded"]          # (8, fc2_dims) bf16, rows >= 2 are zero
    b3t = params["b3t_padded"]          # (8, 1) f32,        rows >= 2 are zero
    OUT_PAD, K = w3t.shape

    tm = _pick_tm(B)
    grid = (pl.cdiv(B, tm),)            # ragged last block handled by Pallas masking

    out_t = pl.pallas_call(
        actor_forward_kernel,
        out_shape=jax.ShapeDtypeStruct((OUT_PAD, B), jnp.float32),
        grid_spec=pl.GridSpec(
            grid=grid,
            in_specs=[
                pl.BlockSpec((tm, D), lambda i: (i, 0)),         # state tile
                pl.BlockSpec((OUT_PAD, K), lambda i: (0, 0)),    # fc3 weight^T (resident)
                pl.BlockSpec((OUT_PAD, 1), lambda i: (0, 0)),    # fc3 bias^T   (resident)
            ],
            out_specs=pl.BlockSpec((OUT_PAD, tm), lambda i: (0, i)),
        ),
        compiler_params=pltpu.CompilerParams(
            dimension_semantics=("parallel",),
            vmem_limit_bytes=32 * 1024 * 1024),
    )(state, w3t, b3t)

    # Transposed, sublane-padded kernel output; restore the logical (B, 2) view.
    # (Padded rows 2..7 are exact zeros and are dropped here; ragged batch lanes
    # past B never exist in the (OUT_PAD, B) result.)
    return out_t[:2, :].T


def init_actor_params(key, input_dims, fc1_dims, fc2_dims, n_actions):
    """nn.Linear-style U(-1/sqrt(fan_in), +1/sqrt(fan_in)) init.

    fc3 is stored transposed and sublane-padded (2 -> 8 rows) so the kernel can do
    an unmasked (8, tm) store with the batch on the lane axis; the weight is
    pre-cast to bf16 once (halved DMA, MXU-native), the bias stays f32 and is
    added to the f32 accumulator.
    """
    del n_actions  # fc3 outputs 2 regardless of n_actions, per the module __init__
    keys = jax.random.split(key, 6)

    def linear(kw, kb, fan_in, fan_out):
        bound = 1.0 / math.sqrt(fan_in)
        w = jax.random.uniform(kw, (fan_in, fan_out), jnp.float32, -bound, bound)
        b = jax.random.uniform(kb, (1, fan_out), jnp.float32, -bound, bound)
        return w, b

    w1, b1 = linear(keys[0], keys[1], input_dims, fc1_dims)
    w2, b2 = linear(keys[2], keys[3], fc1_dims, fc2_dims)
    w3, b3 = linear(keys[4], keys[5], fc2_dims, 2)

    w3t_padded = jnp.zeros((SUBLANE, fc2_dims), jnp.float32).at[:2, :].set(w3.T)
    b3t_padded = jnp.zeros((SUBLANE, 1), jnp.float32).at[:2, :].set(b3.T)

    return {
        "w1": w1, "b1": b1,             # dead in forward(); kept for module parity
        "w2": w2, "b2": b2,             # dead in forward(); kept for module parity
        "w3": w3, "b3": b3,
        "w3t_padded": w3t_padded.astype(jnp.bfloat16),
        "b3t_padded": b3t_padded,
    }


if __name__ == "__main__":
    # Small shapes consistent with the module: the reference forward requires
    # input_dims == fc1_dims == fc2_dims for the Linear calls on `state` to be valid.
    B = 2
    INPUT_DIMS = FC1_DIMS = FC2_DIMS = 32
    N_ACTIONS = 4  # unused by fc3 (out=2), kept for signature parity

    key = jax.random.PRNGKey(0)
    k_state, k_params = jax.random.split(key)
    state = jax.random.normal(k_state, (B, INPUT_DIMS), dtype=jnp.float32)
    params = init_actor_params(k_params, INPUT_DIMS, FC1_DIMS, FC2_DIMS, N_ACTIONS)

    out = actor_forward(state, params)
    out = jax.block_until_ready(out)

    # Pure-JAX reference of the module's (buggy) forward: result == fc3(state).
    ref = state @ params["w3"] + params["b3"]
    assert out.shape == (B, 2)
    # Kernel uses bf16 weight/state with f32 accumulation -> loose tolerance vs f32 ref.
    assert jnp.allclose(out, ref, atol=2e-2, rtol=2e-2)

    print("KERNEL_OK")
</pallas_src>

<mosaic_0001>
module attributes {stable_mosaic.version = 11 : i64} {
  func.func @actor_forward_kernel(%arg0: i32, %arg1: memref<2x32xf32, #tpu.memory_space<vmem>>, %arg2: memref<8x32xbf16, #tpu.memory_space<vmem>>, %arg3: memref<8x1xf32, #tpu.memory_space<vmem>>, %arg4: memref<8x2xf32, #tpu.memory_space<vmem>>) attributes {dimension_semantics = [#tpu.dimension_semantics<parallel>], iteration_bounds = array<i64: 1>, scalar_prefetch = 0 : i64, scratch_operands = 0 : i64, tpu.core_type = #tpu.core_type<tc>, window_params = [{transform_indices = @transform_0, window_bounds = array<i64: 2, 32>}, {pipeline_mode = #tpu.pipeline_mode<synchronous>, transform_indices = @transform_1, window_bounds = array<i64: 8, 32>}, {pipeline_mode = #tpu.pipeline_mode<synchronous>, transform_indices = @transform_2, window_bounds = array<i64: 8, 1>}, {transform_indices = @transform_3, window_bounds = array<i64: 8, 2>}]} {
    %c0 = arith.constant 0 : index
    %c0_0 = arith.constant 0 : index
    %0 = vector.load %arg1[%c0, %c0_0] : memref<2x32xf32, #tpu.memory_space<vmem>>, vector<2x32xf32>
    %1 = arith.truncf %0 : vector<2x32xf32> to vector<2x32xbf16>
    %c0_1 = arith.constant 0 : index
    %c0_2 = arith.constant 0 : index
    %2 = vector.load %arg2[%c0_1, %c0_2] : memref<8x32xbf16, #tpu.memory_space<vmem>>, vector<8x32xbf16>
    %cst = arith.constant dense<0.000000e+00> : vector<8x2xf32>
    %3 = tpu.matmul %2, %1, %cst {dimension_numbers = #tpu.dot_dimension_numbers<[1], [1], [0], [0], [0, 0, 1, 0], [], []>} : vector<8x32xbf16>, vector<2x32xbf16>, vector<8x2xf32> -> vector<8x2xf32>
    %c0_3 = arith.constant 0 : index
    %c0_4 = arith.constant 0 : index
    %4 = vector.load %arg3[%c0_3, %c0_4] : memref<8x1xf32, #tpu.memory_space<vmem>>, vector<8x1xf32>
    %5 = vector.broadcast %4 : vector<8x1xf32> to vector<8x2xf32>
    %6 = arith.addf %3, %5 : vector<8x2xf32>
    %c0_5 = arith.constant 0 : index
    %c0_6 = arith.constant 0 : index
    %7 = vector.load %arg4[%c0_5, %c0_6] : memref<8x2xf32, #tpu.memory_space<vmem>>, vector<8x2xf32>
    tpu.vector_store %arg4[%c0_5, %c0_6], %6 {strides = array<i32>} : memref<8x2xf32, #tpu.memory_space<vmem>>, vector<8x2xf32>,
    return
  }
  func.func @transform_0(%arg0: i32) -> (i32, i32) {
    %c0_i32 = arith.constant 0 : i32
    %c0_i32_0 = arith.constant 0 : i32
    return %arg0, %c0_i32 : i32, i32
  }
  func.func @transform_1(%arg0: i32) -> (i32, i32) {
    %c0_i32 = arith.constant 0 : i32
    %c0_i32_0 = arith.constant 0 : i32
    %c0_i32_1 = arith.constant 0 : i32
    return %c0_i32, %c0_i32_0 : i32, i32
  }
  func.func @transform_2(%arg0: i32) -> (i32, i32) {
    %c0_i32 = arith.constant 0 : i32
    %c0_i32_0 = arith.constant 0 : i32
    %c0_i32_1 = arith.constant 0 : i32
    return %c0_i32, %c0_i32_0 : i32, i32
  }
  func.func @transform_3(%arg0: i32) -> (i32, i32) {
    %c0_i32 = arith.constant 0 : i32
    %c0_i32_0 = arith.constant 0 : i32
    return %c0_i32, %arg0 : i32, i32
  }
}

</mosaic_0001>

<bundles_post_ra>
// kernel: tpu_custom_call.1
= control target key start
LH: loop header
LB: loop body
LE: loop exit
PB: predicated region body
PF: predicated region fallthrough
CT: control target
= control target key end

     0   :  { %v90_v0 = vmov 0.0   ;;  %vm24_vm0 = vcmask 261120   ;;  %vm91_vm1 = vmmov 0   ;;  %v92_v4 = vmov 0   ;;  %s125_s0 = inlined_call_operand.vmem [shape: f32[2,32], index: 0, kind: input, shape index: {}]   ;;  %s126_s2 = inlined_call_operand.vmem [shape: f32[8,1], index: 2, kind: input, shape index: {}]   ;;  %s127_s1 = inlined_call_operand.vmem [shape: bf16[8,32], index: 1, kind: input, shape index: {}]   ;;  %s128_s3 = inlined_call_operand.vmem [shape: f32[8,2], index: 3, kind: output, shape index: {}]  }
   0x1   :  { %80 = vmatprep.subr.bf16.mxu0 %v90_v0  ;;  %v15_v1 = vld [vmem:[%s125_s0] sm:$0x3]  ;;  %82 = vmatprep.mubr.msk.bf16.mxu0 %vm91_vm1, %v90_v0  ;;  %vm71_vm2 = vcmask 15360  }
   0x2   :  { %v18_v2 = vld [vmem:[%s126_s2] sm:$0xff]  ;;  %v16_v3 = vpack.c.bf16 %v15_v1, %v15_v1  ;;  %89 = vset.pattern.permute.xlu0 %v92_v4 }
   0x3   :  { %21 = vperm.xlu0 %89, %v18_v2   ;;  %v17_v6 = vld [vmem:[%s127_s1] sm:$0xf] }
   0x4   :  { %v29_v5 = vsel %vm24_vm0, %v16_v3, 0 }
   0x5   :  { %81 = vmatpush3.bf16.xpose.msra.mxu0 %v29_v5 }
   0xc   :  { %83 = vmatmul.mubr.msk.bf16.vlgmr.msra.gmra.mrb[0].mxu0 %vm24_vm0, %v17_v6 }
  0x82   :  { %v22_v7 = vpop.permute.xlu0 %21 }
  0xdf   :  { %v65_v8 = vpop.f32.mrb[0].mxu0 }
  0xe0   :  { %v66_v9 = vadd.f32 %v65_v8, %v22_v7  ;;  %v84_v10 = vpop.f32.mrb[1].mxu0 }
  0xe1   :  { %v68_v11 = vpop.f32.mrb[2].mxu0 }
  0xe2   :  { %72 = vst.msk [vmem:[%s128_s3] sm:$0xff] %vm71_vm2, %v66_v9  ;;  %v85_v12 = vpop.f32.mrb[3].mxu0 }

</bundles_post_ra>
